<compile_context>
chip_gen: v7x
topology: tpu7x:2x2x1
jax: 0.10.0
libtpu: 0.0.40
codegen_flags: <defaults>
</compile_context>

<pallas_src>
import jax
import jax.numpy as jnp
from jax.experimental import pallas as pl
from jax.experimental.pallas import tpu as pltpu

# ----------------------------- configuration -------------------------------
B = 2              # batch
N_REGIONS = 256    # image regions (16 x 16 spatial grid)
EMBED_SIZE = 32    # embed_size
NUM_CHANNELS = 32  # num_channels (attention hidden size)
DTYPE = jnp.float32


# ----------------------------- Pallas kernel -------------------------------
def _attention_kernel(vi_ref, vq_ref, wi_ref, bi_ref, wq_ref, bq_ref,
                      wa_ref, o_ref):
    vi_t = vi_ref[...]            # (E, N): image regions on the lane axis
    vq_c = vq_ref[...]            # (E, 1): question feature as a column

    # hi^T = W_img @ vi^T -> (C, N);  hq^T = W_qst @ vq^T -> (C, 1)   (MXU)
    hi = jnp.dot(wi_ref[...], vi_t, preferred_element_type=jnp.float32) + bi_ref[...]
    hq = jnp.dot(wq_ref[...], vq_c, preferred_element_type=jnp.float32) + bq_ref[...]

    # ha = tanh(hi + hq): (C, N) = (32, 256) -> 8 fully-packed vregs; hq (C, 1)
    # broadcasts along lanes.
    # TODO(synk): nn.Dropout(p=0.5) is eval-mode identity here (no PRNG masking).
    ha = jnp.tanh(hi + hq)                                               # (C, N)

    # ff_attention on the MXU: (1, C) @ (C, N) -> (1, N) row of logits.
    # ff_attention.bias is intentionally omitted: a constant shift before
    # softmax is a mathematical no-op.
    att = jnp.dot(wa_ref[...], ha, preferred_element_type=jnp.float32)  # (1, N)

    # Numerically-stable softmax over the region (lane) axis; normalization is
    # folded into the final (E, 1) output column instead of dividing p by denom
    # over all 256 regions.
    att = att - jnp.max(att, axis=-1, keepdims=True)
    p = jnp.exp(att)                                   # (1, N)
    denom = jnp.sum(p, axis=-1, keepdims=True)         # (1, 1)

    # u = (pi * vi).sum(regions) + vq : sublane-broadcast multiply + lane reduce.
    acc = jnp.sum(vi_t * p, axis=-1, keepdims=True)    # (E, 1)
    o_ref[...] = (acc / denom + vq_c).astype(o_ref.dtype)
    # TODO(synk): PyTorch also caches `self.pi`; the attention map is not an
    # output of this kernel.


# ----------------------------- wrapper --------------------------------------
@jax.jit
def attention_forward(params, vi, vq):
    b, n, e = vi.shape
    c = params["w_img"].shape[0]

    # Layout plumbing (cheap wrapper-side transposes/reshapes):
    vi_t = jnp.transpose(vi, (0, 2, 1))        # (B, E, N): regions on lanes
    vq_c = vq[:, :, None]                      # (B, E, 1): question as a column
    b_img = params["b_img"][:, None]           # (C, 1)
    b_qst = params["b_qst"][:, None]           # (C, 1)

    out = pl.pallas_call(
        _attention_kernel,
        out_shape=jax.ShapeDtypeStruct((b, e, 1), vi.dtype),
        grid=(b,),
        in_specs=[
            # one batch row per grid step; leading dim squeezed away
            pl.BlockSpec((pl.Squeezed(), e, n), lambda i: (i, 0, 0)),   # vi^T
            pl.BlockSpec((pl.Squeezed(), e, 1), lambda i: (i, 0, 0)),   # vq col
            # weights/biases: same block every step -> stay resident in VMEM
            pl.BlockSpec((c, e), lambda i: (0, 0)),                     # W_img (out,in)
            pl.BlockSpec((c, 1), lambda i: (0, 0)),                     # b_img
            pl.BlockSpec((c, e), lambda i: (0, 0)),                     # W_qst
            pl.BlockSpec((c, 1), lambda i: (0, 0)),                     # b_qst
            pl.BlockSpec((1, c), lambda i: (0, 0)),                     # W_att (1, C)
        ],
        out_specs=pl.BlockSpec((pl.Squeezed(), e, 1), lambda i: (i, 0, 0)),
        compiler_params=pltpu.CompilerParams(
            dimension_semantics=("parallel",)),
    )(vi_t, vq_c, params["w_img"], b_img, params["w_qst"], b_qst, params["w_att"])
    return out[:, :, 0]                        # (B, E)


# ----------------------------- parameters -----------------------------------
def init_params(key):
    ks = jax.random.split(key, 6)
    n = lambda k, shape, s=0.1: (s * jax.random.normal(k, shape)).astype(DTYPE)
    return {
        # PyTorch nn.Linear layout: weight is (out_features, in_features).
        "w_img": n(ks[0], (NUM_CHANNELS, EMBED_SIZE)),
        "b_img": n(ks[1], (NUM_CHANNELS,)),
        "w_qst": n(ks[2], (NUM_CHANNELS, EMBED_SIZE)),
        "b_qst": n(ks[3], (NUM_CHANNELS,)),
        "w_att": n(ks[4], (1, NUM_CHANNELS)),   # ff_attention: out_features = 1
        # b_att is kept only for the reference; adding it before softmax is a
        # no-op, so the kernel never loads it.
        "b_att": n(ks[5], (1,)),
    }


# ----------------------------- plain-JAX reference ---------------------------
def reference_forward(params, vi, vq):
    hi = jnp.einsum("bne,ce->bnc", vi, params["w_img"],
                    precision="highest") + params["b_img"]
    hq = (jnp.einsum("be,ce->bc", vq, params["w_qst"], precision="highest")
          + params["b_qst"])[:, None, :]
    ha = jnp.tanh(hi + hq)
    att = jnp.einsum("bnc,c->bn", ha, params["w_att"][0],
                     precision="highest") + params["b_att"][0]
    pi = jax.nn.softmax(att, axis=1)[..., None]
    return jnp.sum(pi * vi, axis=1) + vq


# ----------------------------- main ------------------------------------------
if __name__ == "__main__":
    key = jax.random.PRNGKey(0)
    k_params, k_vi, k_vq = jax.random.split(key, 3)

    params = init_params(k_params)
    vi = jax.random.normal(k_vi, (B, N_REGIONS, EMBED_SIZE), dtype=DTYPE)
    vq = jax.random.normal(k_vq, (B, EMBED_SIZE), dtype=DTYPE)

    out = jax.block_until_ready(attention_forward(params, vi, vq))
    assert out.shape == (B, EMBED_SIZE)

    ref = jax.block_until_ready(reference_forward(params, vi, vq))
    assert jnp.allclose(out, ref, atol=1e-3, rtol=1e-3), "mismatch vs plain-JAX reference"

    print("KERNEL_OK")
</pallas_src>

<mosaic_0001>
module attributes {stable_mosaic.version = 11 : i64} {
  func.func @_attention_kernel(%arg0: i32, %arg1: memref<1x32x256xf32, #tpu.memory_space<vmem>>, %arg2: memref<1x32x1xf32, #tpu.memory_space<vmem>>, %arg3: memref<32x32xf32, #tpu.memory_space<vmem>>, %arg4: memref<32x1xf32, #tpu.memory_space<vmem>>, %arg5: memref<32x32xf32, #tpu.memory_space<vmem>>, %arg6: memref<32x1xf32, #tpu.memory_space<vmem>>, %arg7: memref<1x32xf32, #tpu.memory_space<vmem>>, %arg8: memref<1x32x1xf32, #tpu.memory_space<vmem>>) attributes {dimension_semantics = [#tpu.dimension_semantics<parallel>], iteration_bounds = array<i64: 2>, scalar_prefetch = 0 : i64, scratch_operands = 0 : i64, tpu.core_type = #tpu.core_type<tc>, window_params = [{transform_indices = @transform_0, window_bounds = array<i64: 1, 32, 256>}, {transform_indices = @transform_1, window_bounds = array<i64: 1, 32, 1>}, {pipeline_mode = #tpu.pipeline_mode<synchronous>, transform_indices = @transform_2, window_bounds = array<i64: 32, 32>}, {pipeline_mode = #tpu.pipeline_mode<synchronous>, transform_indices = @transform_3, window_bounds = array<i64: 32, 1>}, {pipeline_mode = #tpu.pipeline_mode<synchronous>, transform_indices = @transform_4, window_bounds = array<i64: 32, 32>}, {pipeline_mode = #tpu.pipeline_mode<synchronous>, transform_indices = @transform_5, window_bounds = array<i64: 32, 1>}, {pipeline_mode = #tpu.pipeline_mode<synchronous>, transform_indices = @transform_6, window_bounds = array<i64: 1, 32>}, {transform_indices = @transform_7, window_bounds = array<i64: 1, 32, 1>}]} {
    %c0 = arith.constant 0 : index
    %c0_0 = arith.constant 0 : index
    %c0_1 = arith.constant 0 : index
    %0 = vector.load %arg1[%c0, %c0_0, %c0_1] : memref<1x32x256xf32, #tpu.memory_space<vmem>>, vector<1x32x256xf32>
    %1 = vector.shape_cast %0 : vector<1x32x256xf32> to vector<32x256xf32>
    %c0_2 = arith.constant 0 : index
    %c0_3 = arith.constant 0 : index
    %c0_4 = arith.constant 0 : index
    %2 = vector.load %arg2[%c0_2, %c0_3, %c0_4] : memref<1x32x1xf32, #tpu.memory_space<vmem>>, vector<1x32x1xf32>
    %3 = vector.shape_cast %2 : vector<1x32x1xf32> to vector<32x1xf32>
    %c0_5 = arith.constant 0 : index
    %c0_6 = arith.constant 0 : index
    %4 = vector.load %arg3[%c0_5, %c0_6] : memref<32x32xf32, #tpu.memory_space<vmem>>, vector<32x32xf32>
    %cst = arith.constant dense<0.000000e+00> : vector<32x256xf32>
    %5 = tpu.matmul %4, %1, %cst {dimension_numbers = #tpu.dot_dimension_numbers<[1], [0], [0], [1], [0, 0, 1, 1], [], []>} : vector<32x32xf32>, vector<32x256xf32>, vector<32x256xf32> -> vector<32x256xf32>
    %c0_7 = arith.constant 0 : index
    %c0_8 = arith.constant 0 : index
    %6 = vector.load %arg4[%c0_7, %c0_8] : memref<32x1xf32, #tpu.memory_space<vmem>>, vector<32x1xf32>
    %7 = vector.broadcast %6 : vector<32x1xf32> to vector<32x256xf32>
    %8 = arith.addf %5, %7 : vector<32x256xf32>
    %c0_9 = arith.constant 0 : index
    %c0_10 = arith.constant 0 : index
    %9 = vector.load %arg5[%c0_9, %c0_10] : memref<32x32xf32, #tpu.memory_space<vmem>>, vector<32x32xf32>
    %cst_11 = arith.constant dense<0.000000e+00> : vector<32x1xf32>
    %10 = tpu.matmul %9, %3, %cst_11 {dimension_numbers = #tpu.dot_dimension_numbers<[1], [0], [0], [1], [0, 0, 1, 1], [], []>} : vector<32x32xf32>, vector<32x1xf32>, vector<32x1xf32> -> vector<32x1xf32>
    %c0_12 = arith.constant 0 : index
    %c0_13 = arith.constant 0 : index
    %11 = vector.load %arg6[%c0_12, %c0_13] : memref<32x1xf32, #tpu.memory_space<vmem>>, vector<32x1xf32>
    %12 = arith.addf %10, %11 : vector<32x1xf32>
    %13 = vector.broadcast %12 : vector<32x1xf32> to vector<32x256xf32>
    %14 = arith.addf %8, %13 : vector<32x256xf32>
    %15 = math.tanh %14 : vector<32x256xf32>
    %c0_14 = arith.constant 0 : index
    %c0_15 = arith.constant 0 : index
    %16 = vector.load %arg7[%c0_14, %c0_15] : memref<1x32xf32, #tpu.memory_space<vmem>>, vector<1x32xf32>
    %cst_16 = arith.constant dense<0.000000e+00> : vector<1x256xf32>
    %17 = tpu.matmul %16, %15, %cst_16 {dimension_numbers = #tpu.dot_dimension_numbers<[1], [0], [0], [1], [0, 0, 1, 1], [], []>} : vector<1x32xf32>, vector<32x256xf32>, vector<1x256xf32> -> vector<1x256xf32>
    %cst_17 = arith.constant dense<0xFF800000> : vector<1xf32>
    %18 = vector.multi_reduction <maximumf>, %17, %cst_17 [1] : vector<1x256xf32> to vector<1xf32>
    %19 = vector.shape_cast %18 : vector<1xf32> to vector<1x1xf32>
    %20 = vector.broadcast %19 : vector<1x1xf32> to vector<1x256xf32>
    %21 = arith.subf %17, %20 : vector<1x256xf32>
    %22 = math.exp %21 : vector<1x256xf32>
    %cst_18 = arith.constant dense<0.000000e+00> : vector<1xf32>
    %23 = vector.multi_reduction <add>, %22, %cst_18 [1] : vector<1x256xf32> to vector<1xf32>
    %24 = vector.shape_cast %23 : vector<1xf32> to vector<1x1xf32>
    %25 = vector.broadcast %22 : vector<1x256xf32> to vector<32x256xf32>
    %26 = arith.mulf %1, %25 : vector<32x256xf32>
    %cst_19 = arith.constant dense<0.000000e+00> : vector<32xf32>
    %27 = vector.multi_reduction <add>, %26, %cst_19 [1] : vector<32x256xf32> to vector<32xf32>
    %28 = vector.shape_cast %27 : vector<32xf32> to vector<32x1xf32>
    %29 = vector.broadcast %24 : vector<1x1xf32> to vector<32x1xf32>
    %30 = arith.divf %28, %29 : vector<32x1xf32>
    %31 = arith.addf %30, %3 : vector<32x1xf32>
    %c0_20 = arith.constant 0 : index
    %c0_21 = arith.constant 0 : index
    %c0_22 = arith.constant 0 : index
    %32 = vector.load %arg8[%c0_20, %c0_21, %c0_22] : memref<1x32x1xf32, #tpu.memory_space<vmem>>, vector<1x32x1xf32>
    %33 = vector.shape_cast %32 : vector<1x32x1xf32> to vector<32x1xf32>
    %34 = vector.shape_cast %31 : vector<32x1xf32> to vector<1x32x1xf32>
    tpu.vector_store %arg8[%c0_20, %c0_21, %c0_22], %34 {strides = array<i32>} : memref<1x32x1xf32, #tpu.memory_space<vmem>>, vector<1x32x1xf32>,
    return
  }
  func.func @transform_0(%arg0: i32) -> (i32, i32, i32) {
    %c0_i32 = arith.constant 0 : i32
    %c0_i32_0 = arith.constant 0 : i32
    %c0_i32_1 = arith.constant 0 : i32
    return %arg0, %c0_i32, %c0_i32_0 : i32, i32, i32
  }
  func.func @transform_1(%arg0: i32) -> (i32, i32, i32) {
    %c0_i32 = arith.constant 0 : i32
    %c0_i32_0 = arith.constant 0 : i32
    %c0_i32_1 = arith.constant 0 : i32
    return %arg0, %c0_i32, %c0_i32_0 : i32, i32, i32
  }
  func.func @transform_2(%arg0: i32) -> (i32, i32) {
    %c0_i32 = arith.constant 0 : i32
    %c0_i32_0 = arith.constant 0 : i32
    %c0_i32_1 = arith.constant 0 : i32
    return %c0_i32, %c0_i32_0 : i32, i32
  }
  func.func @transform_3(%arg0: i32) -> (i32, i32) {
    %c0_i32 = arith.constant 0 : i32
    %c0_i32_0 = arith.constant 0 : i32
    %c0_i32_1 = arith.constant 0 : i32
    return %c0_i32, %c0_i32_0 : i32, i32
  }
  func.func @transform_4(%arg0: i32) -> (i32, i32) {
    %c0_i32 = arith.constant 0 : i32
    %c0_i32_0 = arith.constant 0 : i32
    %c0_i32_1 = arith.constant 0 : i32
    return %c0_i32, %c0_i32_0 : i32, i32
  }
  func.func @transform_5(%arg0: i32) -> (i32, i32) {
    %c0_i32 = arith.constant 0 : i32
    %c0_i32_0 = arith.constant 0 : i32
    %c0_i32_1 = arith.constant 0 : i32
    return %c0_i32, %c0_i32_0 : i32, i32
  }
  func.func @transform_6(%arg0: i32) -> (i32, i32) {
    %c0_i32 = arith.constant 0 : i32
    %c0_i32_0 = arith.constant 0 : i32
    %c0_i32_1 = arith.constant 0 : i32
    return %c0_i32, %c0_i32_0 : i32, i32
  }
  func.func @transform_7(%arg0: i32) -> (i32, i32, i32) {
    %c0_i32 = arith.constant 0 : i32
    %c0_i32_0 = arith.constant 0 : i32
    %c0_i32_1 = arith.constant 0 : i32
    return %arg0, %c0_i32, %c0_i32_0 : i32, i32, i32
  }
}

</mosaic_0001>

<bundles_post_ra>
// kernel: attention_forward.1
= control target key start
LH: loop header
LB: loop body
LE: loop exit
PB: predicated region body
PF: predicated region fallthrough
CT: control target
= control target key end

     0   :  { %12 = vsyncpa [#allocation3], 0  ;;  %s1019_s24 = smov 0   ;;  %s1186_s0 = inlined_call_operand.vmem [shape: f32[2,32,256], index: 0, kind: input, shape index: {}]   ;;  %s1187_s1 = inlined_call_operand.vmem [shape: f32[2,32,1], index: 1, kind: input, shape index: {}]   ;;  %s1188_s2 = inlined_call_operand.vmem [shape: f32[32,32], index: 2, kind: input, shape index: {}]   ;;  %s1189_s3 = inlined_call_operand.vmem [shape: f32[32,1], index: 3, kind: input, shape index: {}]   ;;  %s1190_s4 = inlined_call_operand.hbm [shape: f32[32,32], index: 4, kind: input, shape index: {}]   ;;  %s1191_s5 = inlined_call_operand.vmem [shape: f32[32,1], index: 5, kind: input, shape index: {}]   ;;  %s1192_s6 = inlined_call_operand.vmem [shape: f32[1,32], index: 6, kind: input, shape index: {}]   ;;  %s1193_s7 = inlined_call_operand.vmem [shape: f32[2,32,1], index: 7, kind: output, shape index: {}]  }
   0x1 LB: > { %s1025_s25 = sadd.s32 4294967295, %s972_s24   ;;  %p816_p0 = scmp.ge.s32.totalorder %s972_s24, 1  ;;  %s972_s24 = sphi %s1019_s24, %s18_s24  }
   0x2   : > { %p206_p1 = scmp.lt.s32.totalorder %s972_s24, 3  ;;  %s974_s26 = smov [#allocation2]  }
   0x3   : > { %s224_s27 = sshll.u32 %s974_s26, 4  ;;  %p1194_p3 = scmp.eq.s32.totalorder %s1025_s25, 0  ;;  %s225_s27 = int_to_ptr.vmem [resolvable:$true] %s224_s27 }
   0x4   : > { %p1029_p2 = pnand %p816_p0, %p206_p1  ;;  %s934_s9 = scalar_lea.hbm %s1190_s4, 512 }
   0x5   : > { %p935_p6 = scmp.ne.s32.totalorder %s1190_s4, %s934_s9  ;;  %p941_p10 = scmp.lt.u32.totalorder %s934_s9, %s1190_s4 }
   0x6   : > { %s1196_s28 = scalar_select %p1029_p2, 1, 0 }
   0x7   : > { %p891_p4 = pneg %p1029_p2 }
   0x9   : > { %p1038_p5 = pnand %p1194_p3, %p891_p4 }
   0xb   : > { %p936_p7 = pneg %p1038_p5 }
   0xd   : > { %p937_p8 = pnand %p936_p7, %p935_p6 }
   0xf   : > { %p938_p9 = pneg %p937_p8 }
  0x11   : > { %p943_p11 = pnand %p941_p10, %p938_p9 }
  0x13   : > { %946 = shalt.err (!%p943_p11)
}
  0x14   : > { %s947_s14 = scalar_lea.vmem %s225_s27, 512  ;;  %p955_p1 = scmp.lt.s32.totalorder %s225_s27, %s225_s27 }
  0x15   : > { %p948_p12 = scmp.ne.s32.totalorder %s225_s27, %s947_s14  ;;  %p956_p4 = scmp.lt.s32.totalorder %s947_s14, %s947_s14 }
  0x17   : > { %p950_p13 = pnand %p948_p12, %p936_p7  ;;  %p957_p3 = por %p956_p4, %p955_p1 }
  0x19   : > { %p951_p0 = pneg %p950_p13 }
  0x1b   : > { %p958_p2 = pnand %p957_p3, %p951_p0 }
  0x1d   : > { %961 = shalt.err (!%p958_p2)
}
  0x1e   : > { %s975_s15 = smov 128   ;;  %s976_s16 = smov 8  }
  0x1f   : > { %894 = dma.hbm_to_vmem [thread:$0]  (!%p1038_p5), %s1190_s4, 512, %s225_s27, [#allocation3], %s975_s15, %s975_s15, %s976_s16  }
  0x20   : > { %p1198_p6 = scmp.ne.s32.totalorder %s1196_s28, 0 }
  0x21   : > { %p1199_p8 = scmp.eq.s32.totalorder (!%p1198_p6), %s1025_s25, 0 }
  0x22   : > { %262 = sbr.rel (%p1198_p6) target bundleno = 966 (0x3c6), region = 48 }
  0x29   : > { %967 = dma.done.wait (%p1199_p8), [#allocation3], 512   ;;  %p1200_p7 = pmov %p1199_p8 }
  0x2a   : > { %p299_p2 = scmp.lt.s32.totalorder %s1025_s25, 1  ;;  %v977_v0 = vmov 0.0   ;;  %v978_v1 = vmov 0   ;;  %vm354_vm0 = vcmask 261120   ;;  %v456_v7 = vld [vmem:[#allocation2] sm:$0xff]  ;;  %v333_v22 = vld [vmem:[%s1189_s3 + $0x18] sm:$0xff] }
  0x2b   : > { %969 = vsyncadd (%p1200_p7), [#allocation3], 4294966784  ;;  %431 = vmatprep.mubr.f32.mxu0 %v977_v0  ;;  %910 = vset.pattern.permute.xlu0 %v978_v1  ;;  %v330_v20 = vld [vmem:[%s1189_s3] sm:$0xff]  ;;  %v457_v23 = vld [vmem:[#allocation2 + $0x8] sm:$0xff]  ;;  %vm672_vm1 = vcmask 1040384   ;;  %vm730_vm2 = vcmask 7168  }
  0x2c   : > { %s1202_s25 = smov (!%p299_p2, %s1025_s25), 1  ;;  %911 = vset.pattern.permute.xlu1 %v978_v1  ;;  %857 = vmatprep.mubr.msk.f32.mxu1 %vm354_vm0, %v456_v7  ;;  %v458_v24 = vld [vmem:[#allocation2 + $0x10] sm:$0xff]  ;;  %v331_v25 = vld [vmem:[%s1189_s3 + $0x8] sm:$0xff]  ;;  %v326_v26 = vld [vmem:[%s1188_s2] sm:$0xff] }
  0x2d   : > { %s838_s19 = sshll.u32 %s1202_s25, 6  ;;  %s839_s20 = sshll.u32 %s1202_s25, 5  ;;  %336 = vperm.xlu0 %910, %v330_v20   ;;  %351 = vperm.xlu1 %911, %v333_v22   ;;  %v459_v27 = vld [vmem:[#allocation2 + $0x18] sm:$0xff]  ;;  %v332_v28 = vld [vmem:[%s1189_s3 + $0x10] sm:$0xff]  ;;  %v327_v29 = vld [vmem:[%s1188_s2 + $0x8] sm:$0xff] }
  0x2e   : > { %s308_s23 = scalar_lea.vmem %s1187_s1, %s839_s20  ;;  %s303_s28 = scalar_lea.vmem %s1186_s0, %s838_s19  ;;  %v328_v30 = vld [vmem:[%s1188_s2 + $0x10] sm:$0xff]  ;;  %v329_v31 = vld [vmem:[%s1188_s2 + $0x18] sm:$0xff]  ;;  %v461_v32 = vld [vmem:[%s1191_s5 + $0x8] sm:$0xff] }
  0x2f   : > { %v1078_v2 = vld [vmem:[%s308_s23] sm:$0xff]  ;;  %v1080_v3 = vld [vmem:[%s308_s23 + $0x8] sm:$0xff]  ;;  %v1082_v4 = vld [vmem:[%s308_s23 + $0x10] sm:$0xff]  ;;  %s313_s14 = scalar_lea.vmem %s1193_s7, %s839_s20 }
  0x30   : > { %v871_v5 = vpack.c.bf16 %v1080_v3, %v1078_v2  ;;  %v1086_v6 = vld [vmem:[%s308_s23 + $0x18] sm:$0xff]  ;;  %v1091_v9 = vld [vmem:[%s303_s28 + $0x8] sm:$0xff]  ;;  %v1095_v11 = vld [vmem:[%s303_s28] sm:$0xff] }
  0x31   : > { %v875_v8 = vpack.c.bf16 %v1086_v6, %v1082_v4  ;;  %v1093_v10 = vld [vmem:[%s303_s28 + $0x18] sm:$0xff]  ;;  %v1097_v12 = vld [vmem:[%s303_s28 + $0x10] sm:$0xff]  ;;  %v1103_v15 = vld [vmem:[%s303_s28 + $0x28] sm:$0xff]  ;;  %341 = vperm.xlu0 %910, %v331_v25  }
  0x32   : > { %872 = vmatprep.subr.bf16.mxu1 %v871_v5  ;;  %v863_v13 = vpack.c.bf16 %v1093_v10, %v1091_v9  ;;  %v865_v14 = vpack.c.bf16 %v1097_v12, %v1095_v11  ;;  %v1105_v16 = vld [vmem:[%s303_s28 + $0x38] sm:$0xff]  ;;  %v1107_v17 = vld [vmem:[%s303_s28 + $0x20] sm:$0xff]  ;;  %v1111_v19 = vld [vmem:[%s303_s28 + $0x30] sm:$0xff] }
  0x33   : > { %874 = vmatpush3.bf16.msra.mxu1 %v871_v5  ;;  %v867_v18 = vpack.c.bf16 %v1105_v16, %v1103_v15  ;;  %v869_v21 = vpack.c.bf16 %v1111_v19, %v1107_v17  ;;  %v460_v36 = vld [vmem:[%s1191_s5] sm:$0xff]  ;;  %v462_v37 = vld [vmem:[%s1191_s5 + $0x10] sm:$0xff]  ;;  %v463_v39 = vld [vmem:[%s1191_s5 + $0x18] sm:$0xff] }
  0x34   : > { %876 = vmatprep.subr.bf16.mxu1 %v875_v8  ;;  %864 = vmatprep.subr.bf16.mxu0 %v863_v13 }
  0x35   : > { %866 = vmatpush1.bf16.msra.mxu0 %v865_v14  ;;  %346 = vperm.xlu0 %910, %v332_v28  }
  0x36   : > { %868 = vmatprep.subr.bf16.mxu0 %v867_v18 }
  0x37   : > { %878 = vmatpush3.bf16.msra.mxu1 %v875_v8 }
  0x39   : > { %870 = vmatpush1.bf16.msra.mxu0 %v869_v21 }
  0x3a   : > { %858 = vmatmul.mubr.msk.f32.vlgmr.msra.gmra.mrb[0].mxu1 %vm354_vm0, %v457_v23 }
  0x3b   : > { %860 = vmatprep.mubr.msk.f32.mxu1 %vm354_vm0, %v458_v24 }
  0x3c   : > { %827 = vmatmul.mubr.msk.f32.vlgmr.msra.gmra.mrb[0].mxu0 %vm354_vm0, %v326_v26 }
  0x3d   : > { %437 = vmatprep.mubr.f32.mxu0 %v977_v0 }
  0x3e   : > { %861 = vmatmul.mubr.msk.f32.gmra.mrb[2].mxu1 %vm354_vm0, %v459_v27 }
  0x3f   : > { %665 = vmatprep.mubr.f32.mxu1 %v977_v0 }
  0x40   : > { %828 = vmatmul.mubr.msk.f32.gmra.mrb[2].mxu0 %vm354_vm0, %v327_v29 }
  0x41   : > { %443 = vmatprep.mubr.f32.mxu0 %v977_v0 }
  0x44   : > { %829 = vmatmul.mubr.msk.f32.gmra.mrb[4].mxu0 %vm354_vm0, %v328_v30 }
  0x45   : > { %449 = vmatprep.mubr.f32.mxu0 %v977_v0 }
  0x48   : > { %830 = vmatmul.mubr.msk.f32.gmra.mrb[6].mxu0 %vm354_vm0, %v329_v31 }
  0xac   : > { %v337_v52 = vpop.permute.xlu0 %336  ;;  %v352_v53 = vpop.permute.xlu1 %351 }
  0xb0   : > { %v342_v54 = vpop.permute.xlu0 %341 }
  0xb4   : > { %v347_v58 = vpop.permute.xlu0 %346 }
 0x10d   : > { %v859_v33 = vpop.f32.mrb[0].mxu1 }
 0x10e   : > { %v548_v34 = vadd.f32 %v859_v33, %v461_v32  ;;  %v542_v35 = vpop.f32.mrb[1].mxu1 }
 0x10f   : > { %v433_v38 = vpop.f32.mrb[0].mxu0  ;;  %v543_v42 = vadd.f32 %v542_v35, %v460_v36  ;;  %v597_v36 = vld [vmem:[%s1192_s6] sm:$0x1] }
 0x110   : > { %568 = vperm.xlu1 %911, %v548_v34   ;;  %v435_v41 = vpop.f32.mrb[1].mxu0  ;;  %v434_v61 = vadd.f32 %v433_v38, %v337_v52 }
 0x111   : > { %v862_v40 = vpop.f32.mrb[2].mxu1  ;;  %v436_v62 = vadd.f32 %v435_v41, %v337_v52 }
 0x112   : > { %v552_v43 = vpop.f32.mrb[3].mxu1  ;;  %v558_v45 = vadd.f32 %v862_v40, %v463_v39 }
 0x113   : > { %v553_v44 = vadd.f32 %v552_v43, %v462_v37  ;;  %v439_v46 = vpop.f32.mrb[2].mxu0 }
 0x114   : > { %563 = vperm.xlu1 %911, %v543_v42   ;;  %v441_v47 = vpop.f32.mrb[3].mxu0  ;;  %v440_v55 = vadd.f32 %v439_v46, %v342_v54 }
 0x115   : > { %573 = vperm.xlu0 %910, %v553_v44   ;;  %v442_v56 = vadd.f32 %v441_v47, %v342_v54  ;;  %v689_v47 = vlaneseq }
 0x117   : > { %v445_v48 = vpop.f32.mrb[4].mxu0 }
 0x118   : > { %578 = vperm.xlu1 %911, %v558_v45   ;;  %v447_v49 = vpop.f32.mrb[5].mxu0  ;;  %v446_v63 = vadd.f32 %v445_v48, %v347_v58  ;;  %v690_v48 = vshrl.u32 %v689_v47, 7 }
 0x119   : > { %v448_v0 = vadd.f32 %v447_v49, %v347_v58 }
 0x11a   : > { %v691_v49 = vsub.s32 0, %v690_v48 }
 0x11b   : > { %v451_v50 = vpop.f32.mrb[6].mxu0 }
 0x11c   : > { %v453_v51 = vpop.f32.mrb[7].mxu0  ;;  %v452_v18 = vadd.f32 %v451_v50, %v352_v53 }
 0x11d   : > { %v454_v20 = vadd.f32 %v453_v51, %v352_v53 }
 0x18f   : > { %v569_v57 = vpop.permute.xlu1 %568 }
 0x190   : > { %v583_v59 = vadd.f32 %v569_v57, %v440_v55  ;;  %v584_v60 = vadd.f32 %v569_v57, %v442_v56 }
 0x192   : > { %912 = vtanh.f32 %v583_v59 }
 0x193   : > { %v564_v1 = vpop.permute.xlu1 %563  ;;  %914 = vtanh.f32 %v584_v60 }
 0x194   : > { %v581_v5 = vadd.f32 %v564_v1, %v434_v61  ;;  %v582_v7 = vadd.f32 %v564_v1, %v436_v62  ;;  %v574_v8 = vpop.permute.xlu0 %573 }
 0x195   : > { %v585_v13 = vadd.f32 %v574_v8, %v446_v63  ;;  %v586_v14 = vadd.f32 %v574_v8, %v448_v0 }
 0x196   : > { %916 = vtanh.f32 %v581_v5 }
 0x197   : > { %918 = vtanh.f32 %v582_v7  ;;  %v579_v21 = vpop.permute.xlu1 %578 }
 0x198   : > { %920 = vtanh.f32 %v585_v13  ;;  %v587_v22 = vadd.f32 %v579_v21, %v452_v18  ;;  %v588_v23 = vadd.f32 %v579_v21, %v454_v20 }
 0x199   : > { %922 = vtanh.f32 %v586_v14 }
 0x19a   : > { %924 = vtanh.f32 %v587_v22 }
 0x19b   : > { %926 = vtanh.f32 %v588_v23 }
 0x19c   : > { %v913_v24 = vpop.eup %912 }
 0x19d   : > { %v915_v25 = vpop.eup %914 }
 0x1a0   : > { %v917_v26 = vpop.eup %916 }
 0x1a1   : > { %v919_v27 = vpop.eup %918  ;;  %v881_v28 = vpack.c.bf16 %v913_v24, %v917_v26 }
 0x1a2   : > { %v921_v29 = vpop.eup %920  ;;  %v879_v30 = vpack.c.bf16 %v915_v25, %v919_v27 }
 0x1a3   : > { %v923_v31 = vpop.eup %922 }
 0x1a4   : > { %v925_v32 = vpop.eup %924  ;;  %880 = vmatprep.subr.bf16.mxu1 %v879_v30 }
 0x1a5   : > { %v927_v33 = vpop.eup %926  ;;  %882 = vmatpush1.bf16.msra.mxu1 %v881_v28  ;;  %v885_v34 = vpack.c.bf16 %v925_v32, %v921_v29 }
 0x1a6   : > { %v883_v35 = vpack.c.bf16 %v927_v33, %v923_v31 }
 0x1a8   : > { %884 = vmatprep.subr.bf16.mxu1 %v883_v35 }
 0x1a9   : > { %886 = vmatpush1.bf16.msra.mxu1 %v885_v34 }
 0x1ac   : > { %835 = vmatmul.mubr.msk.f32.vlgmr.msra.gmra.mrb[4].mxu1 %vm354_vm0, %v597_v36 }
 0x27f   : > { %v667_v37 = vpop.f32.mrb[4].mxu1 }
 0x280   : > { %v673_v38 = vsel %vm672_vm1, %v667_v37, -inf  ;;  %v669_v39 = vpop.f32.mrb[5].mxu1 }
 0x281   : > { %v674_v40 = vsel %vm672_vm1, %v669_v39, -inf }
 0x282   : > { %v675_v41 = vmax.f32 %v673_v38, %v674_v40 }
 0x284   : > { %676 = vmax.xlane.f32.xlu0 %v675_v41 }
 0x311   : > { %v677_v42 = vpop.xlane.xlu0 %676 }
 0x312   : > { %v678_v43 = vsub.f32 %v667_v37, %v677_v42  ;;  %v679_v44 = vsub.f32 %v669_v39, %v677_v42 }
 0x314   : > { %v680_v45 = vmul.f32 1.442695, %v678_v43  ;;  %v682_v46 = vmul.f32 1.442695, %v679_v44 }
 0x316   : > { %928 = vpow2.f32 %v680_v45 }
 0x317   : > { %930 = vpow2.f32 %v682_v46 }
 0x320   : > { %v929_v50 = vpop.eup %928 }
 0x321   : > { %v931_v51 = vpop.eup %930  ;;  %v684_v52 = vsel %vm672_vm1, %v929_v50, 0.0  ;;  %v692_v53 = vrot.slane %v929_v50, %v691_v49 }
 0x322   : > { %v685_v54 = vsel %vm672_vm1, %v931_v51, 0.0  ;;  %v696_v55 = vrot.slane %v931_v51, %v691_v49 }
 0x323   : > { %v686_v56 = vadd.f32 %v685_v54, %v684_v52  ;;  %v697_v57 = vmul.f32 %v692_v53, %v1095_v11  ;;  %v701_v58 = vmul.f32 %v692_v53, %v1107_v17  ;;  %v699_v59 = vmul.f32 %v692_v53, %v1097_v12 }
 0x324   : > { %v698_v60 = vmul.f32 %v696_v55, %v1091_v9  ;;  %v702_v61 = vmul.f32 %v696_v55, %v1103_v15  ;;  %v700_v62 = vmul.f32 %v696_v55, %v1093_v10  ;;  %v703_v63 = vmul.f32 %v692_v53, %v1111_v19 }
 0x325   : > { %687 = vadd.xlane.f32.xlu1 %v686_v56  ;;  %v704_v0 = vmul.f32 %v696_v55, %v1105_v16 }
 0x326   : > { %v705_v1 = vadd.f32 %v698_v60, %v697_v57  ;;  %v711_v5 = vadd.f32 %v702_v61, %v701_v58  ;;  %v708_v7 = vadd.f32 %v700_v62, %v699_v59 }
 0x327   : > { %v714_v8 = vadd.f32 %v704_v0, %v703_v63 }
 0x328   : > { %706 = vadd.xlane.f32.xlu0 %v705_v1 }
 0x329   : > { %712 = vadd.xlane.f32.xlu1 %v711_v5 }
 0x32c   : > { %709 = vadd.xlane.f32.xlu0 %v708_v7 }
 0x330   : > { %715 = vadd.xlane.f32.xlu0 %v714_v8 }
 0x3b2   : > { %v688_v11 = vpop.xlane.xlu1 %687 }
 0x3b3   : > { %v720_v9 = vrot.slane %v688_v11, %v691_v49 }
 0x3b5   : > { %932 = vrcp.f32 %v720_v9  ;;  %v707_v12 = vpop.xlane.xlu0 %706 }
 0x3b6   : > { %v713_v17 = vpop.xlane.xlu1 %712 }
 0x3b9   : > { %v710_v15 = vpop.xlane.xlu0 %709 }
 0x3bd   : > { %v716_v19 = vpop.xlane.xlu0 %715 }
 0x3bf   : > { %v933_v10 = vpop.eup %932 }
 0x3c0   : > { %v722_v13 = vmul.f32 %v933_v10, %v707_v12  ;;  %v724_v14 = vmul.f32 %v933_v10, %v713_v17  ;;  %v723_v16 = vmul.f32 %v933_v10, %v710_v15  ;;  %v725_v18 = vmul.f32 %v933_v10, %v716_v19 }
 0x3c2   : > { %v726_v20 = vadd.f32 %v722_v13, %v1078_v2  ;;  %v728_v21 = vadd.f32 %v724_v14, %v1082_v4  ;;  %v727_v22 = vadd.f32 %v723_v16, %v1080_v3  ;;  %v729_v23 = vadd.f32 %v725_v18, %v1086_v6 }
 0x3c4   : > { %731 = vst.msk [vmem:[%s313_s14] sm:$0xff] %vm730_vm2, %v726_v20  ;;  %733 = vst.msk [vmem:[%s313_s14 + $0x10] sm:$0xff] %vm730_vm2, %v728_v21 }
 0x3c5   : > { %732 = vst.msk [vmem:[%s313_s14 + $0x8] sm:$0xff] %vm730_vm2, %v727_v22  ;;  %734 = vst.msk [vmem:[%s313_s14 + $0x18] sm:$0xff] %vm730_vm2, %v729_v23 }
 0x3c6 PF: > { %s18_s24 = sadd.s32 1, %s972_s24  }
 0x3c7   : > { %p15_p3 = scmp.ge.s32.totalorder %s18_s24, 4  }
 0x3c9   :  { %17 = sbr.rel (!%p15_p3) target bundleno = 1 (0x1), region = 86 }
 0x3d0   :  { %756 = vsyncpa [#allocation3], 1 }
 0x3d1   :  { %758 = vsyncpa [#allocation3 + $0x1], 1 }

</bundles_post_ra>
